<compile_context>
chip_gen: v5e
topology: v5e:2x2
jax: 0.10.0
libtpu: 0.0.40
codegen_flags: <defaults>
</compile_context>

<pallas_src>
import math

import jax
import jax.numpy as jnp
from jax.experimental import pallas as pl
from jax.experimental.pallas import tpu as pltpu

LANE = 128
SUBLANE = 8
MAX_BLOCK_ROWS = 1024      # (1024, 128) f32 block = 512 KiB per input per step
NUM_PARALLEL = 2           # row-range split across v7x's 2 TensorCores


def _make_sse_kernel(rows, block_rows, nb, per_p, num_parallel):
    """Build the sum-of-squared-error kernel for a static problem size."""
    needs_row_mask = (rows % block_rows) != 0
    needs_block_guard = (num_parallel * per_p) != nb

    def kernel(o_ref, t_ref, out_ref, acc_ref):
        p = pl.program_id(0)   # parallel row-range (megacore sharding on v7x)
        r = pl.program_id(1)   # sequential reduction over row blocks

        @pl.when(r == 0)
        def _init():
            acc_ref[...] = jnp.zeros_like(acc_ref)

        def _accumulate():
            diff = o_ref[...].astype(jnp.float32) - t_ref[...].astype(jnp.float32)
            sq = diff * diff
            if needs_row_mask:
                # Partial last block: zero contributions from rows >= rows.
                blk = p * per_p + r
                row_ids = blk * block_rows + jax.lax.broadcasted_iota(
                    jnp.int32, (block_rows, LANE), 0)
                sq = jnp.where(row_ids < rows, sq, 0.0)
            acc_ref[...] = acc_ref[...] + sq

        if needs_block_guard:
            # Trailing programs past the last real row block contribute nothing.
            pl.when(p * per_p + r < nb)(_accumulate)
        else:
            _accumulate()

        @pl.when(r == per_p - 1)
        def _finalize():
            # One cross-vreg reduce per program; output stays lane-dense (8,128).
            part = acc_ref[...].reshape(block_rows // SUBLANE, SUBLANE, LANE)
            out_ref[...] = jnp.sum(part, axis=0)

    return kernel


def _mse_pallas(outputs: jax.Array, targets: jax.Array) -> jax.Array:
    """Mean squared error over all elements, computed in a Pallas kernel."""
    assert outputs.shape == targets.shape
    n_elems = math.prod(outputs.shape)

    o_flat = outputs.reshape(-1)
    t_flat = targets.reshape(-1)

    # Only pad when n_elems is not already a multiple of one (8,128) tile.
    # Equal zero-padding on both sides contributes 0 to the squared-diff sum.
    # TODO(synk): for very large non-tile-aligned tensors, a fully masked tail
    # block would avoid even this one-off copy.
    min_tile = SUBLANE * LANE
    pad = (-n_elems) % min_tile
    if pad:
        o_flat = jnp.pad(o_flat, (0, pad))
        t_flat = jnp.pad(t_flat, (0, pad))

    rows = (n_elems + pad) // LANE            # multiple of SUBLANE
    o2d = o_flat.reshape(rows, LANE)
    t2d = t_flat.reshape(rows, LANE)

    block_rows = min(MAX_BLOCK_ROWS, rows)    # multiple of 8, <= rows
    nb = pl.cdiv(rows, block_rows)            # number of row blocks
    num_parallel = NUM_PARALLEL if nb >= NUM_PARALLEL else 1
    per_p = pl.cdiv(nb, num_parallel)         # row blocks per parallel program

    def in_map(p, r):
        # Clamp so trailing (masked-out) programs never DMA out of bounds.
        return (jnp.minimum(p * per_p + r, nb - 1), 0)

    itemsize = jnp.dtype(outputs.dtype).itemsize
    cost = pl.CostEstimate(
        flops=3 * n_elems,
        transcendentals=0,
        bytes_accessed=2 * (n_elems + pad) * itemsize
        + num_parallel * SUBLANE * LANE * 4,
    )

    partials = pl.pallas_call(
        _make_sse_kernel(rows, block_rows, nb, per_p, num_parallel),
        out_shape=jax.ShapeDtypeStruct((num_parallel * SUBLANE, LANE), jnp.float32),
        grid_spec=pltpu.PrefetchScalarGridSpec(
            num_scalar_prefetch=0,
            grid=(num_parallel, per_p),
            in_specs=[
                pl.BlockSpec((block_rows, LANE), in_map),
                pl.BlockSpec((block_rows, LANE), in_map),
            ],
            out_specs=pl.BlockSpec((SUBLANE, LANE), lambda p, r: (p, 0)),
            scratch_shapes=[pltpu.VMEM((block_rows, LANE), jnp.float32)],
        ),
        compiler_params=pltpu.CompilerParams(
            dimension_semantics=("parallel", "arbitrary"),
        ),
        cost_estimate=cost,
    )(o2d, t2d)

    return (jnp.sum(partials) / jnp.float32(n_elems)).astype(jnp.float32)


class ThermodynamicLoss:
    """JAX/Pallas equivalent of M2D2's ThermodynamicLoss forward pass."""

    def __init__(self, config=None):
        # config weights (mse/energy/entropy/...) are unused by the forward,
        # matching the PyTorch reference which only returns the MSE term.
        self.config = config
        self._mse = jax.jit(_mse_pallas)

    def __call__(self, outputs, targets, energies, temperature, degeneracies,
                 access_history=None):
        # TODO(synk): the PyTorch module's logging.info debug prints are
        # host-side side effects with no Pallas equivalent; omitted.
        mse_loss = self._mse(outputs, targets)
        return {"total_loss": mse_loss}


if __name__ == "__main__":
    key = jax.random.PRNGKey(0)
    k_out, k_tgt, k_e, k_d = jax.random.split(key, 4)

    # small NCHW shapes consistent with the module's elementwise MSE forward
    B, C, H, W = 2, 4, 16, 16
    outputs = jax.random.normal(k_out, (B, C, H, W), dtype=jnp.float32)
    targets = jax.random.normal(k_tgt, (B, C, H, W), dtype=jnp.float32)
    energies = jax.random.normal(k_e, (B, C), dtype=jnp.float32)        # unused
    temperature = jnp.float32(1.0)                                      # unused
    degeneracies = jax.random.uniform(k_d, (B, C), dtype=jnp.float32)   # unused

    loss_fn = ThermodynamicLoss()
    result = loss_fn(outputs, targets, energies, temperature, degeneracies)
    total = jax.block_until_ready(result["total_loss"])

    # correctness check vs plain-JAX reference
    ref = jnp.mean((outputs - targets) ** 2)
    assert jnp.allclose(total, ref, rtol=1e-6, atol=1e-6), (total, ref)

    print("KERNEL_OK")
</pallas_src>

<mosaic_0001>
module attributes {stable_mosaic.version = 11 : i64} {
  func.func @kernel(%arg0: i32, %arg1: i32, %arg2: memref<16x128xf32, #tpu.memory_space<vmem>>, %arg3: memref<16x128xf32, #tpu.memory_space<vmem>>, %arg4: memref<8x128xf32, #tpu.memory_space<vmem>>, %arg5: memref<16x128xf32, #tpu.memory_space<vmem>>) attributes {dimension_semantics = [#tpu.dimension_semantics<parallel>, #tpu.dimension_semantics<arbitrary>], iteration_bounds = array<i64: 1, 1>, scalar_prefetch = 0 : i64, scratch_operands = 1 : i64, tpu.core_type = #tpu.core_type<tc>, window_params = [{transform_indices = @transform_0, window_bounds = array<i64: 16, 128>}, {transform_indices = @transform_1, window_bounds = array<i64: 16, 128>}, {transform_indices = @transform_2, window_bounds = array<i64: 8, 128>}]} {
    %c0_i32 = arith.constant 0 : i32
    %0 = arith.cmpi eq, %arg1, %c0_i32 : i32
    %1 = arith.extui %0 : i1 to i32
    %c0_i32_0 = arith.constant 0 : i32
    %2 = arith.cmpi ne, %1, %c0_i32_0 : i32
    scf.if %2 {
      %cst = arith.constant 0.000000e+00 : f32
      %13 = vector.broadcast %cst : f32 to vector<16x128xf32>
      %c0_10 = arith.constant 0 : index
      %c0_11 = arith.constant 0 : index
      %14 = vector.load %arg5[%c0_10, %c0_11] : memref<16x128xf32, #tpu.memory_space<vmem>>, vector<16x128xf32>
      tpu.vector_store %arg5[%c0_10, %c0_11], %13 {strides = array<i32>} : memref<16x128xf32, #tpu.memory_space<vmem>>, vector<16x128xf32>,
    } else {
    }
    %c0 = arith.constant 0 : index
    %c0_1 = arith.constant 0 : index
    %3 = vector.load %arg2[%c0, %c0_1] : memref<16x128xf32, #tpu.memory_space<vmem>>, vector<16x128xf32>
    %c0_2 = arith.constant 0 : index
    %c0_3 = arith.constant 0 : index
    %4 = vector.load %arg3[%c0_2, %c0_3] : memref<16x128xf32, #tpu.memory_space<vmem>>, vector<16x128xf32>
    %5 = arith.subf %3, %4 : vector<16x128xf32>
    %6 = arith.mulf %5, %5 : vector<16x128xf32>
    %c0_4 = arith.constant 0 : index
    %c0_5 = arith.constant 0 : index
    %7 = vector.load %arg5[%c0_4, %c0_5] : memref<16x128xf32, #tpu.memory_space<vmem>>, vector<16x128xf32>
    %8 = arith.addf %7, %6 : vector<16x128xf32>
    %c0_6 = arith.constant 0 : index
    %c0_7 = arith.constant 0 : index
    %9 = vector.load %arg5[%c0_6, %c0_7] : memref<16x128xf32, #tpu.memory_space<vmem>>, vector<16x128xf32>
    tpu.vector_store %arg5[%c0_6, %c0_7], %8 {strides = array<i32>} : memref<16x128xf32, #tpu.memory_space<vmem>>, vector<16x128xf32>,
    %c0_i32_8 = arith.constant 0 : i32
    %10 = arith.cmpi eq, %arg1, %c0_i32_8 : i32
    %11 = arith.extui %10 : i1 to i32
    %c0_i32_9 = arith.constant 0 : i32
    %12 = arith.cmpi ne, %11, %c0_i32_9 : i32
    scf.if %12 {
      %c0_10 = arith.constant 0 : index
      %c0_11 = arith.constant 0 : index
      %13 = vector.load %arg5[%c0_10, %c0_11] : memref<16x128xf32, #tpu.memory_space<vmem>>, vector<16x128xf32>
      %14 = vector.shape_cast %13 : vector<16x128xf32> to vector<2x8x128xf32>
      %cst = arith.constant dense<0.000000e+00> : vector<8x128xf32>
      %15 = vector.multi_reduction <add>, %14, %cst [0] : vector<2x8x128xf32> to vector<8x128xf32>
      %c0_12 = arith.constant 0 : index
      %c0_13 = arith.constant 0 : index
      %16 = vector.load %arg4[%c0_12, %c0_13] : memref<8x128xf32, #tpu.memory_space<vmem>>, vector<8x128xf32>
      tpu.vector_store %arg4[%c0_12, %c0_13], %15 {strides = array<i32>} : memref<8x128xf32, #tpu.memory_space<vmem>>, vector<8x128xf32>,
    } else {
    }
    return
  }
  func.func @transform_0(%arg0: i32, %arg1: i32) -> (i32, i32) {
    %c1_i32 = arith.constant 1 : i32
    %0 = arith.muli %arg0, %c1_i32 : i32
    %1 = arith.addi %0, %arg1 : i32
    %c0_i32 = arith.constant 0 : i32
    %2 = arith.minsi %1, %c0_i32 : i32
    %c0_i32_0 = arith.constant 0 : i32
    %c0_i32_1 = arith.constant 0 : i32
    return %2, %c0_i32_0 : i32, i32
  }
  func.func @transform_1(%arg0: i32, %arg1: i32) -> (i32, i32) {
    %c1_i32 = arith.constant 1 : i32
    %0 = arith.muli %arg0, %c1_i32 : i32
    %1 = arith.addi %0, %arg1 : i32
    %c0_i32 = arith.constant 0 : i32
    %2 = arith.minsi %1, %c0_i32 : i32
    %c0_i32_0 = arith.constant 0 : i32
    %c0_i32_1 = arith.constant 0 : i32
    return %2, %c0_i32_0 : i32, i32
  }
  func.func @transform_2(%arg0: i32, %arg1: i32) -> (i32, i32) {
    %c0_i32 = arith.constant 0 : i32
    %c0_i32_0 = arith.constant 0 : i32
    return %arg0, %c0_i32 : i32, i32
  }
}

</mosaic_0001>

<bundles_post_ra>
// kernel: _mse_pallas.1
= control target key start
LH: loop header
LB: loop body
LE: loop exit
PB: predicated region body
PF: predicated region fallthrough
CT: control target
= control target key end

     0   :  { %s148_s0 = inlined_call_operand.vmem [shape: f32[16,128], index: 0, kind: input, shape index: {}]   ;;  %s149_s1 = inlined_call_operand.vmem [shape: f32[16,128], index: 1, kind: input, shape index: {}]   ;;  %s150_s2 = inlined_call_operand.vmem [shape: f32[8,128], index: 2, kind: output, shape index: {}]  }
   0x1   :  { %v81_v0 = vld [vmem:[%s148_s0] sm:$0xff]  ;;  %v82_v1 = vld [vmem:[%s148_s0 + $0x8] sm:$0xff] }
   0x2   :  { %v83_v2 = vld [vmem:[%s149_s1] sm:$0xff]  ;;  %v84_v3 = vld [vmem:[%s149_s1 + $0x8] sm:$0xff] }
   0x3   :  { %v85_v4 = vsub.f32 %v81_v0, %v83_v2  ;;  %v86_v5 = vsub.f32 %v82_v1, %v84_v3 }
   0x5   :  { %v87_v6 = vmul.f32 %v85_v4, %v85_v4  ;;  %v88_v7 = vmul.f32 %v86_v5, %v86_v5 }
   0x7   :  { %v100_v8 = vadd.f32 %v88_v7, %v87_v6 }
   0x9   :  { %101 = vst [vmem:[%s150_s2] sm:$0xff] %v100_v8 }

</bundles_post_ra>
